<compile_context>
chip_gen: v7x
topology: tpu7x:2x2x1
jax: 0.10.0
libtpu: 0.0.40
codegen_flags: <defaults>
</compile_context>

<pallas_src>
import jax
import jax.numpy as jnp
from jax.experimental import pallas as pl
from jax.experimental.pallas import tpu as pltpu


def _round_up(x, m):
    return ((x + m - 1) // m) * m


def _mlp_kernel(x_ref, w1_ref, b1_ref, w2_ref, b2_ref, w3_ref, b3_ref, o_ref):
    # x arrives as f32 (single HBM read of the source data); cast to bf16 on
    # the VPU here -- free under DMA slack.  MXU accumulates in f32.
    x = x_ref[...].astype(jnp.bfloat16)

    # fc1 + ReLU
    h = jnp.dot(x, w1_ref[...], preferred_element_type=jnp.float32)
    h = jnp.maximum(h + b1_ref[...], 0.0)

    # fc2 + ReLU
    h = jnp.dot(h.astype(jnp.bfloat16), w2_ref[...],
                preferred_element_type=jnp.float32)
    h = jnp.maximum(h + b2_ref[...], 0.0)

    # fc3 + ReLU (narrow out_dim: masked store, cost hidden under DMA)
    h = jnp.dot(h.astype(jnp.bfloat16), w3_ref[...],
                preferred_element_type=jnp.float32)
    o_ref[...] = jnp.maximum(h + b3_ref[...], 0.0)


def _device_kind():
    try:
        return jax.devices()[0].device_kind.lower()
    except Exception:
        return ""


def _vmem_limit_bytes():
    # v7x has 64 MiB physical VMEM -> keep the scoped limit <= 48 MiB.
    # v5e / v6e have 128 MiB -> 96 MiB scoped is safe and allows bigger tiles.
    return (48 << 20) if "v7" in _device_kind() else (96 << 20)


def _pick_tiling(n, input_dim, hidden, out_dim, vmem_limit):
    """Derive batch tile tm from a VMEM byte budget; guarantee enough grid
    steps for DMA/compute overlap and for v7x TensorCore splitting; use
    balanced tiles so row padding never blows up."""
    LANE, SUB = 128, 8  # x tile stays f32 -> 8-row sublane granularity

    def lp(d):
        return _round_up(d, LANE)

    # Resident operands (counted double-buffered: pipeline_mode left default).
    # TODO(synk): single-buffer the constant-index weights via
    # pipeline_mode=pl.Buffered(1) once verified to lower on this JAX version.
    resident = 2 * (
        _round_up(input_dim, 16) * lp(hidden) * 2     # w1 bf16
        + _round_up(hidden, 16) * lp(hidden) * 2      # w2 bf16
        + _round_up(hidden, 16) * lp(out_dim) * 2     # w3 bf16
        + 3 * 8 * lp(max(hidden, out_dim)) * 4        # biases f32
    )

    # Per-row VMEM cost of one grid step: f32 x tile + f32 out tile (both
    # double-buffered) + f32 activation intermediates inside the kernel.
    per_row = (
        2 * lp(input_dim) * 4
        + 2 * lp(out_dim) * 4
        + 3 * lp(hidden) * 4
    )

    budget = int(vmem_limit * 0.75) - resident
    tm_cap = max(SUB, min(1024, (budget // per_row) // SUB * SUB))

    n_rows = _round_up(max(n, 1), SUB)
    # Prefer >=4 grid steps when the batch is big enough (tiles of >=8 rows)
    # so double-buffering engages and both v7x TensorCores get work; never
    # force extra padding for tiny batches.
    max_tiles = max(n_rows // SUB, 1)
    min_tiles = min(4, max_tiles)
    num_tiles = max(pl.cdiv(n_rows, tm_cap), min_tiles)
    tm = min(tm_cap, _round_up(pl.cdiv(n_rows, num_tiles), SUB))
    n_pad = _round_up(n_rows, tm)
    return tm, n_pad


def prepare_params(params):
    """One-time parameter prep (call once, outside the hot path):
    bf16 MXU weights stored (in, out), f32 row-vector biases."""
    return {
        "w1": params["w1"].astype(jnp.bfloat16),
        "w2": params["w2"].astype(jnp.bfloat16),
        "w3": params["w3"].astype(jnp.bfloat16),
        "b1": params["b1"].reshape(1, -1).astype(jnp.float32),
        "b2": params["b2"].reshape(1, -1).astype(jnp.float32),
        "b3": params["b3"].reshape(1, -1).astype(jnp.float32),
    }


@jax.jit
def mlp_forward(x, prepped):
    """x: (N, C, H, W) float32.  prepped: output of prepare_params()."""
    n = x.shape[0]
    x2d = x.reshape(n, -1)                      # torch: x.view(x.size(0), -1); stays f32
    input_dim = x2d.shape[1]
    hidden = prepped["w1"].shape[1]
    out_dim = prepped["w3"].shape[1]

    vmem_limit = _vmem_limit_bytes()
    tm, n_pad = _pick_tiling(n, input_dim, hidden, out_dim, vmem_limit)
    if n_pad != n:
        x2d = jnp.pad(x2d, ((0, n_pad - n), (0, 0)))   # fuses under jit

    grid = (n_pad // tm,)

    flops = 2 * n_pad * (input_dim * hidden + hidden * hidden + hidden * out_dim)
    bytes_accessed = (
        n_pad * input_dim * 4
        + (prepped["w1"].size + prepped["w2"].size + prepped["w3"].size) * 2
        + (prepped["b1"].size + prepped["b2"].size + prepped["b3"].size) * 4
        + n_pad * out_dim * 4
    )

    out = pl.pallas_call(
        _mlp_kernel,
        out_shape=jax.ShapeDtypeStruct((n_pad, out_dim), jnp.float32),
        grid_spec=pltpu.PrefetchScalarGridSpec(
            num_scalar_prefetch=0,
            grid=grid,
            in_specs=[
                pl.BlockSpec((tm, input_dim), lambda i: (i, 0)),       # x tile (f32)
                pl.BlockSpec((input_dim, hidden), lambda i: (0, 0)),   # w1 resident
                pl.BlockSpec((1, hidden), lambda i: (0, 0)),           # b1 resident
                pl.BlockSpec((hidden, hidden), lambda i: (0, 0)),      # w2 resident
                pl.BlockSpec((1, hidden), lambda i: (0, 0)),           # b2 resident
                pl.BlockSpec((hidden, out_dim), lambda i: (0, 0)),     # w3 resident
                pl.BlockSpec((1, out_dim), lambda i: (0, 0)),          # b3 resident
            ],
            out_specs=pl.BlockSpec((tm, out_dim), lambda i: (i, 0)),
        ),
        compiler_params=pltpu.CompilerParams(
            dimension_semantics=("parallel",),
            vmem_limit_bytes=vmem_limit,
        ),
        cost_estimate=pl.CostEstimate(
            flops=flops, transcendentals=0, bytes_accessed=bytes_accessed),
    )(x2d, prepped["w1"], prepped["b1"], prepped["w2"], prepped["b2"],
      prepped["w3"], prepped["b3"])

    return out[:n]   # row-only slice; fuses under jit (no lane padding to strip)


def init_params(key, input_dim, output_dim, dim):
    """Deterministic init; weights stored as (in, out), f32 master copies
    (matches nn.Linear's y = x @ W.T + b with W.T stored directly)."""
    ks = jax.random.split(key, 6)

    def linear(kw, kb, fan_in, fan_out):
        bound = 1.0 / jnp.sqrt(fan_in)
        w = jax.random.uniform(kw, (fan_in, fan_out), jnp.float32, -bound, bound)
        b = jax.random.uniform(kb, (fan_out,), jnp.float32, -bound, bound)
        return w, b

    w1, b1 = linear(ks[0], ks[1], input_dim, dim)
    w2, b2 = linear(ks[2], ks[3], dim, dim)
    w3, b3 = linear(ks[4], ks[5], dim, output_dim)
    return {"w1": w1, "b1": b1, "w2": w2, "b2": b2, "w3": w3, "b3": b3}


def mlp_reference(x, prepped):
    """Pure-JAX reference mirroring the kernel's numeric path (bf16 MXU
    operands, f32 accumulation / epilogue), same forward semantics as the
    PyTorch module."""
    h = x.reshape(x.shape[0], -1).astype(jnp.bfloat16)
    h = jnp.maximum(
        jnp.dot(h, prepped["w1"], preferred_element_type=jnp.float32)
        + prepped["b1"], 0.0)
    h = jnp.maximum(
        jnp.dot(h.astype(jnp.bfloat16), prepped["w2"],
                preferred_element_type=jnp.float32) + prepped["b2"], 0.0)
    h = jnp.maximum(
        jnp.dot(h.astype(jnp.bfloat16), prepped["w3"],
                preferred_element_type=jnp.float32) + prepped["b3"], 0.0)
    return h


if __name__ == "__main__":
    key = jax.random.PRNGKey(0)
    k_x, k_p = jax.random.split(key)

    # x is NCHW like the PyTorch conv-style input; the MLP flattens it.
    N, C, H, W = 2, 4, 16, 16
    input_dim = C * H * W      # 1024
    dim = 32
    output_dim = 8

    x = jax.random.normal(k_x, (N, C, H, W), jnp.float32)
    params = init_params(k_p, input_dim, output_dim, dim)
    prepped = prepare_params(params)           # one-time cast / reshape

    out = mlp_forward(x, prepped)
    out = jax.block_until_ready(out)

    ref = mlp_reference(x, prepped)
    assert out.shape == (N, output_dim)
    assert jnp.allclose(out, ref, atol=2e-3, rtol=2e-3), "mismatch vs reference"

    print("KERNEL_OK")
</pallas_src>

<mosaic_0001>
module attributes {stable_mosaic.version = 11 : i64} {
  func.func @_mlp_kernel(%arg0: i32, %arg1: memref<8x1024xf32, #tpu.memory_space<vmem>>, %arg2: memref<1024x32xbf16, #tpu.memory_space<vmem>>, %arg3: memref<1x32xf32, #tpu.memory_space<vmem>>, %arg4: memref<32x32xbf16, #tpu.memory_space<vmem>>, %arg5: memref<1x32xf32, #tpu.memory_space<vmem>>, %arg6: memref<32x8xbf16, #tpu.memory_space<vmem>>, %arg7: memref<1x8xf32, #tpu.memory_space<vmem>>, %arg8: memref<8x8xf32, #tpu.memory_space<vmem>>) attributes {dimension_semantics = [#tpu.dimension_semantics<parallel>], iteration_bounds = array<i64: 1>, scalar_prefetch = 0 : i64, scratch_operands = 0 : i64, tpu.core_type = #tpu.core_type<tc>, window_params = [{transform_indices = @transform_0, window_bounds = array<i64: 8, 1024>}, {pipeline_mode = #tpu.pipeline_mode<synchronous>, transform_indices = @transform_1, window_bounds = array<i64: 1024, 32>}, {pipeline_mode = #tpu.pipeline_mode<synchronous>, transform_indices = @transform_2, window_bounds = array<i64: 1, 32>}, {pipeline_mode = #tpu.pipeline_mode<synchronous>, transform_indices = @transform_3, window_bounds = array<i64: 32, 32>}, {pipeline_mode = #tpu.pipeline_mode<synchronous>, transform_indices = @transform_4, window_bounds = array<i64: 1, 32>}, {pipeline_mode = #tpu.pipeline_mode<synchronous>, transform_indices = @transform_5, window_bounds = array<i64: 32, 8>}, {pipeline_mode = #tpu.pipeline_mode<synchronous>, transform_indices = @transform_6, window_bounds = array<i64: 1, 8>}, {transform_indices = @transform_7, window_bounds = array<i64: 8, 8>}]} {
    %c0 = arith.constant 0 : index
    %c0_0 = arith.constant 0 : index
    %0 = vector.load %arg1[%c0, %c0_0] : memref<8x1024xf32, #tpu.memory_space<vmem>>, vector<8x1024xf32>
    %1 = arith.truncf %0 : vector<8x1024xf32> to vector<8x1024xbf16>
    %c0_1 = arith.constant 0 : index
    %c0_2 = arith.constant 0 : index
    %2 = vector.load %arg2[%c0_1, %c0_2] : memref<1024x32xbf16, #tpu.memory_space<vmem>>, vector<1024x32xbf16>
    %cst = arith.constant dense<0.000000e+00> : vector<8x32xf32>
    %3 = tpu.matmul %1, %2, %cst {dimension_numbers = #tpu.dot_dimension_numbers<[1], [0], [0], [1], [0, 0, 1, 1], [], []>} : vector<8x1024xbf16>, vector<1024x32xbf16>, vector<8x32xf32> -> vector<8x32xf32>
    %c0_3 = arith.constant 0 : index
    %c0_4 = arith.constant 0 : index
    %4 = vector.load %arg3[%c0_3, %c0_4] : memref<1x32xf32, #tpu.memory_space<vmem>>, vector<1x32xf32>
    %5 = vector.broadcast %4 : vector<1x32xf32> to vector<8x32xf32>
    %6 = arith.addf %3, %5 : vector<8x32xf32>
    %cst_5 = arith.constant 0.000000e+00 : f32
    %7 = vector.broadcast %cst_5 : f32 to vector<8x32xf32>
    %8 = arith.maximumf %6, %7 : vector<8x32xf32>
    %9 = arith.truncf %8 : vector<8x32xf32> to vector<8x32xbf16>
    %c0_6 = arith.constant 0 : index
    %c0_7 = arith.constant 0 : index
    %10 = vector.load %arg4[%c0_6, %c0_7] : memref<32x32xbf16, #tpu.memory_space<vmem>>, vector<32x32xbf16>
    %cst_8 = arith.constant dense<0.000000e+00> : vector<8x32xf32>
    %11 = tpu.matmul %9, %10, %cst_8 {dimension_numbers = #tpu.dot_dimension_numbers<[1], [0], [0], [1], [0, 0, 1, 1], [], []>} : vector<8x32xbf16>, vector<32x32xbf16>, vector<8x32xf32> -> vector<8x32xf32>
    %c0_9 = arith.constant 0 : index
    %c0_10 = arith.constant 0 : index
    %12 = vector.load %arg5[%c0_9, %c0_10] : memref<1x32xf32, #tpu.memory_space<vmem>>, vector<1x32xf32>
    %13 = vector.broadcast %12 : vector<1x32xf32> to vector<8x32xf32>
    %14 = arith.addf %11, %13 : vector<8x32xf32>
    %cst_11 = arith.constant 0.000000e+00 : f32
    %15 = vector.broadcast %cst_11 : f32 to vector<8x32xf32>
    %16 = arith.maximumf %14, %15 : vector<8x32xf32>
    %17 = arith.truncf %16 : vector<8x32xf32> to vector<8x32xbf16>
    %c0_12 = arith.constant 0 : index
    %c0_13 = arith.constant 0 : index
    %18 = vector.load %arg6[%c0_12, %c0_13] : memref<32x8xbf16, #tpu.memory_space<vmem>>, vector<32x8xbf16>
    %cst_14 = arith.constant dense<0.000000e+00> : vector<8x8xf32>
    %19 = tpu.matmul %17, %18, %cst_14 {dimension_numbers = #tpu.dot_dimension_numbers<[1], [0], [0], [1], [0, 0, 1, 1], [], []>} : vector<8x32xbf16>, vector<32x8xbf16>, vector<8x8xf32> -> vector<8x8xf32>
    %c0_15 = arith.constant 0 : index
    %c0_16 = arith.constant 0 : index
    %20 = vector.load %arg7[%c0_15, %c0_16] : memref<1x8xf32, #tpu.memory_space<vmem>>, vector<1x8xf32>
    %21 = vector.broadcast %20 : vector<1x8xf32> to vector<8x8xf32>
    %22 = arith.addf %19, %21 : vector<8x8xf32>
    %cst_17 = arith.constant 0.000000e+00 : f32
    %23 = vector.broadcast %cst_17 : f32 to vector<8x8xf32>
    %24 = arith.maximumf %22, %23 : vector<8x8xf32>
    %c0_18 = arith.constant 0 : index
    %c0_19 = arith.constant 0 : index
    %25 = vector.load %arg8[%c0_18, %c0_19] : memref<8x8xf32, #tpu.memory_space<vmem>>, vector<8x8xf32>
    tpu.vector_store %arg8[%c0_18, %c0_19], %24 {strides = array<i32>} : memref<8x8xf32, #tpu.memory_space<vmem>>, vector<8x8xf32>,
    return
  }
  func.func @transform_0(%arg0: i32) -> (i32, i32) {
    %c0_i32 = arith.constant 0 : i32
    %c0_i32_0 = arith.constant 0 : i32
    return %arg0, %c0_i32 : i32, i32
  }
  func.func @transform_1(%arg0: i32) -> (i32, i32) {
    %c0_i32 = arith.constant 0 : i32
    %c0_i32_0 = arith.constant 0 : i32
    %c0_i32_1 = arith.constant 0 : i32
    return %c0_i32, %c0_i32_0 : i32, i32
  }
  func.func @transform_2(%arg0: i32) -> (i32, i32) {
    %c0_i32 = arith.constant 0 : i32
    %c0_i32_0 = arith.constant 0 : i32
    %c0_i32_1 = arith.constant 0 : i32
    return %c0_i32, %c0_i32_0 : i32, i32
  }
  func.func @transform_3(%arg0: i32) -> (i32, i32) {
    %c0_i32 = arith.constant 0 : i32
    %c0_i32_0 = arith.constant 0 : i32
    %c0_i32_1 = arith.constant 0 : i32
    return %c0_i32, %c0_i32_0 : i32, i32
  }
  func.func @transform_4(%arg0: i32) -> (i32, i32) {
    %c0_i32 = arith.constant 0 : i32
    %c0_i32_0 = arith.constant 0 : i32
    %c0_i32_1 = arith.constant 0 : i32
    return %c0_i32, %c0_i32_0 : i32, i32
  }
  func.func @transform_5(%arg0: i32) -> (i32, i32) {
    %c0_i32 = arith.constant 0 : i32
    %c0_i32_0 = arith.constant 0 : i32
    %c0_i32_1 = arith.constant 0 : i32
    return %c0_i32, %c0_i32_0 : i32, i32
  }
  func.func @transform_6(%arg0: i32) -> (i32, i32) {
    %c0_i32 = arith.constant 0 : i32
    %c0_i32_0 = arith.constant 0 : i32
    %c0_i32_1 = arith.constant 0 : i32
    return %c0_i32, %c0_i32_0 : i32, i32
  }
  func.func @transform_7(%arg0: i32) -> (i32, i32) {
    %c0_i32 = arith.constant 0 : i32
    %c0_i32_0 = arith.constant 0 : i32
    return %arg0, %c0_i32 : i32, i32
  }
}

</mosaic_0001>

<bundles_post_ra>
// kernel: mlp_forward.1
= control target key start
LH: loop header
LB: loop body
LE: loop exit
PB: predicated region body
PF: predicated region fallthrough
CT: control target
= control target key end

     0   :  { %12 = vsyncpa [#allocation3], 0  ;;  %s1574_s0 = inlined_call_operand.hbm [shape: f32[8,1024], index: 0, kind: input, shape index: {}]   ;;  %s1575_s1 = inlined_call_operand.hbm [shape: bf16[1024,32], index: 1, kind: input, shape index: {}]   ;;  %s1576_s2 = inlined_call_operand.hbm [shape: f32[1,32], index: 2, kind: input, shape index: {}]   ;;  %s1577_s3 = inlined_call_operand.hbm [shape: bf16[32,32], index: 3, kind: input, shape index: {}]   ;;  %s1578_s4 = inlined_call_operand.hbm [shape: f32[1,32], index: 4, kind: input, shape index: {}]   ;;  %s1579_s5 = inlined_call_operand.hbm [shape: bf16[32,8], index: 5, kind: input, shape index: {}]   ;;  %s1580_s6 = inlined_call_operand.hbm [shape: f32[1,8], index: 6, kind: input, shape index: {}]   ;;  %s1581_s7 = inlined_call_operand.hbm [shape: f32[8,8], index: 7, kind: output, shape index: {}]  }
   0x1   :  { %13 = vsyncpa [#allocation6], 0 }
   0x2   :  { %14 = vsyncpa [#allocation9], 0 }
   0x3   :  { %15 = vsyncpa [#allocation12], 0 }
   0x4   :  { %16 = vsyncpa [#allocation4], 0  ;;  %s1417_s24 = smov [#allocation5]   ;;  %s1231_s28 = scalar_lea.hbm %s1575_s1, 8192 }
   0x5   :  { %s32_s25 = sshll.u32 %s1417_s24, 4  ;;  %p1232_p0 = scmp.ne.s32.totalorder %s1575_s1, %s1231_s28  ;;  %s33_s25 = int_to_ptr.vmem [resolvable:$true] %s32_s25 }
   0x6   :  { %p1235_p1 = scmp.lt.u32.totalorder %s1231_s28, %s1575_s1 }
   0x8   :  { %p1237_p2 = pnand %p1235_p1, %p1232_p0 }
   0xa   :  { %1240 = shalt.err (!%p1237_p2)
}
   0xb   :  { %s1241_s10 = scalar_lea.vmem %s33_s25, 8192  ;;  %p1246_p4 = scmp.lt.s32.totalorder %s33_s25, %s33_s25 }
   0xc   :  { %p1242_p3 = scmp.ne.s32.totalorder %s33_s25, %s1241_s10  ;;  %p1247_p5 = scmp.lt.s32.totalorder %s1241_s10, %s1241_s10 }
   0xe   :  { %p1248_p6 = por %p1247_p5, %p1246_p4 }
  0x10   :  { %p1249_p7 = pnand %p1248_p6, %p1242_p3 }
  0x12   :  { %1252 = shalt.err (!%p1249_p7)
}
  0x13   :  { %s1418_s11 = smov 64   ;;  %s1419_s12 = smov 4  }
  0x14   :  { %38 = dma.hbm_to_vmem [thread:$0]  %s1575_s1, 8192, %s33_s25, [#allocation6], %s1418_s11, %s1418_s11, %s1419_s12  }
  0x15   :  { %s1420_s15 = smov [#allocation8]   ;;  %s1421_s17 = smov [#allocation11]  }
  0x16   :  { %s54_s16 = sshll.u32 %s1420_s15, 4  ;;  %s76_s18 = sshll.u32 %s1421_s17, 4  ;;  %s55_s16 = int_to_ptr.vmem [resolvable:$true] %s54_s16  ;;  %s77_s18 = int_to_ptr.vmem [resolvable:$true] %s76_s18 }
  0x17   :  { %s1253_s21 = scalar_lea.hbm %s1577_s3, 256 }
  0x18   :  { %p1254_p8 = scmp.ne.s32.totalorder %s1577_s3, %s1253_s21  ;;  %p1257_p9 = scmp.lt.u32.totalorder %s1253_s21, %s1577_s3 }
  0x1a   :  { %p1259_p10 = pnand %p1257_p9, %p1254_p8 }
  0x1c   :  { %1262 = shalt.err (!%p1259_p10)
}
  0x1d   :  { %s1263_s1 = scalar_lea.vmem %s55_s16, 256  ;;  %p1268_p12 = scmp.lt.s32.totalorder %s55_s16, %s55_s16 }
  0x1e   :  { %p1264_p11 = scmp.ne.s32.totalorder %s55_s16, %s1263_s1  ;;  %p1269_p13 = scmp.lt.s32.totalorder %s1263_s1, %s1263_s1 }
  0x20   :  { %p1270_p0 = por %p1269_p13, %p1268_p12 }
  0x22   :  { %p1271_p1 = pnand %p1270_p0, %p1264_p11 }
  0x24   :  { %1274 = shalt.err (!%p1271_p1)
}
  0x25   :  { %60 = dma.hbm_to_vmem [thread:$0]  %s1577_s3, 256, %s55_s16, [#allocation9], %s1418_s11, %s1418_s11, %s1419_s12  }
  0x26   :  { %s1275_s30 = scalar_lea.hbm %s1579_s5, 256 }
  0x27   :  { %p1276_p2 = scmp.ne.s32.totalorder %s1579_s5, %s1275_s30  ;;  %p1279_p3 = scmp.lt.u32.totalorder %s1275_s30, %s1579_s5 }
  0x29   :  { %p1281_p4 = pnand %p1279_p3, %p1276_p2 }
  0x2b   :  { %1284 = shalt.err (!%p1281_p4)
}
  0x2c   :  { %s1285_s14 = scalar_lea.vmem %s77_s18, 256  ;;  %p1290_p6 = scmp.lt.s32.totalorder %s77_s18, %s77_s18 }
  0x2d   :  { %p1286_p5 = scmp.ne.s32.totalorder %s77_s18, %s1285_s14  ;;  %p1291_p7 = scmp.lt.s32.totalorder %s1285_s14, %s1285_s14 }
  0x2f   :  { %p1292_p8 = por %p1291_p7, %p1290_p6 }
  0x31   :  { %p1293_p9 = pnand %p1292_p8, %p1286_p5 }
  0x33   :  { %1296 = shalt.err (!%p1293_p9)
}
  0x34   :  { %82 = dma.hbm_to_vmem [thread:$0]  %s1579_s5, 256, %s77_s18, [#allocation12], %s1418_s11, %s1418_s11, %s1419_s12  }
  0x35   :  { %s1422_s16 = smov [#allocation2]   ;;  %s1423_s19 = smov [#allocation7]  }
  0x36   :  { %s23_s17 = sshll.u32 %s1422_s16, 4  ;;  %s45_s20 = sshll.u32 %s1423_s19, 4  ;;  %s24_s17 = int_to_ptr.vmem [resolvable:$true] %s23_s17  ;;  %s46_s20 = int_to_ptr.vmem [resolvable:$true] %s45_s20 }
  0x37   :  { %s1297_s23 = scalar_lea.hbm %s1574_s0, 1024 }
  0x38   :  { %p1298_p10 = scmp.ne.s32.totalorder %s1574_s0, %s1297_s23  ;;  %p1301_p11 = scmp.lt.u32.totalorder %s1297_s23, %s1574_s0 }
  0x3a   :  { %p1303_p12 = pnand %p1301_p11, %p1298_p10 }
  0x3c   :  { %1306 = shalt.err (!%p1303_p12)
}
  0x3d   :  { %s1307_s5 = scalar_lea.vmem %s24_s17, 1024  ;;  %p1312_p0 = scmp.lt.s32.totalorder %s24_s17, %s24_s17 }
  0x3e   :  { %p1308_p13 = scmp.ne.s32.totalorder %s24_s17, %s1307_s5  ;;  %p1313_p1 = scmp.lt.s32.totalorder %s1307_s5, %s1307_s5 }
  0x40   :  { %p1314_p2 = por %p1313_p1, %p1312_p0 }
  0x42   :  { %p1315_p3 = pnand %p1314_p2, %p1308_p13 }
  0x44   :  { %1318 = shalt.err (!%p1315_p3)
}
  0x45   :  { %26 = dma.hbm_to_vmem [thread:$0]  %s1574_s0, 1024, %s24_s17, [#allocation3]  }
  0x46   :  { %s1319_s28 = scalar_lea.hbm %s1576_s2, 16 }
  0x47   :  { %p1320_p4 = scmp.ne.s32.totalorder %s1576_s2, %s1319_s28  ;;  %p1323_p5 = scmp.lt.u32.totalorder %s1319_s28, %s1576_s2 }
  0x49   :  { %p1325_p6 = pnand %p1323_p5, %p1320_p4 }
  0x4b   :  { %1328 = shalt.err (!%p1325_p6)
}
  0x4c   :  { %s1329_s10 = scalar_lea.vmem %s46_s20, 16  ;;  %s1333_s13 = scalar_lea.vmem %s46_s20, 32 }
  0x4d   :  { %p1330_p7 = scmp.ne.s32.totalorder %s46_s20, %s1329_s10  ;;  %p1334_p8 = scmp.lt.s32.totalorder %s46_s20, %s46_s20 }
  0x4e   :  { %p1335_p9 = scmp.lt.s32.totalorder %s1333_s13, %s1329_s10 }
  0x50   :  { %p1336_p10 = por %p1335_p9, %p1334_p8 }
  0x52   :  { %p1337_p11 = pnand %p1336_p10, %p1330_p7 }
  0x54   :  { %1340 = shalt.err (!%p1337_p11)
}
  0x55   :  { %48 = dma.hbm_to_vmem [thread:$0]  %s1576_s2, 16, %s46_s20, [#allocation6]  }
  0x56   :  { %s1424_s3 = smov [#allocation10]   ;;  %s1425_s16 = smov [#allocation13]  }
  0x57   :  { %s67_s15 = sshll.u32 %s1424_s3, 4  ;;  %s89_s17 = sshll.u32 %s1425_s16, 4  ;;  %s68_s15 = int_to_ptr.vmem [resolvable:$true] %s67_s15  ;;  %s90_s17 = int_to_ptr.vmem [resolvable:$true] %s89_s17 }
  0x58   :  { %s1341_s22 = scalar_lea.hbm %s1578_s4, 16 }
  0x59   :  { %p1342_p12 = scmp.ne.s32.totalorder %s1578_s4, %s1341_s22  ;;  %p1345_p13 = scmp.lt.u32.totalorder %s1341_s22, %s1578_s4 }
  0x5b   :  { %p1347_p0 = pnand %p1345_p13, %p1342_p12 }
  0x5d   :  { %1350 = shalt.err (!%p1347_p0)
}
  0x5e   :  { %s1351_s2 = scalar_lea.vmem %s68_s15, 16  ;;  %s1355_s20 = scalar_lea.vmem %s68_s15, 32 }
  0x5f   :  { %p1352_p1 = scmp.ne.s32.totalorder %s68_s15, %s1351_s2  ;;  %p1356_p2 = scmp.lt.s32.totalorder %s68_s15, %s68_s15 }
  0x60   :  { %p1357_p3 = scmp.lt.s32.totalorder %s1355_s20, %s1351_s2 }
  0x62   :  { %p1358_p4 = por %p1357_p3, %p1356_p2 }
  0x64   :  { %p1359_p5 = pnand %p1358_p4, %p1352_p1 }
  0x66   :  { %1362 = shalt.err (!%p1359_p5)
}
  0x67   :  { %70 = dma.hbm_to_vmem [thread:$0]  %s1578_s4, 16, %s68_s15, [#allocation9]  }
  0x68   :  { %s1363_s18 = scalar_lea.hbm %s1580_s6, 16 }
  0x69   :  { %p1364_p6 = scmp.ne.s32.totalorder %s1580_s6, %s1363_s18  ;;  %p1367_p7 = scmp.lt.u32.totalorder %s1363_s18, %s1580_s6 }
  0x6b   :  { %p1369_p8 = pnand %p1367_p7, %p1364_p6 }
  0x6d   :  { %1372 = shalt.err (!%p1369_p8)
}
  0x6e   :  { %s1373_s8 = scalar_lea.vmem %s90_s17, 16  ;;  %s1377_s9 = scalar_lea.vmem %s90_s17, 32 }
  0x6f   :  { %p1374_p9 = scmp.ne.s32.totalorder %s90_s17, %s1373_s8  ;;  %p1378_p10 = scmp.lt.s32.totalorder %s90_s17, %s90_s17 }
  0x70   :  { %p1379_p11 = scmp.lt.s32.totalorder %s1377_s9, %s1373_s8 }
  0x72   :  { %p1380_p12 = por %p1379_p11, %p1378_p10 }
  0x74   :  { %p1381_p13 = pnand %p1380_p12, %p1374_p9 }
  0x76   :  { %1384 = shalt.err (!%p1381_p13)
}
  0x77   :  { %92 = dma.hbm_to_vmem [thread:$0]  %s1580_s6, 16, %s90_s17, [#allocation12]  }
  0x78   :  { %1407 = dma.done.wait [#allocation3], 1024  }
  0x79   :  { %1408 = vsyncadd [#allocation3], 4294966272 }
  0x7a   :  { %1409 = dma.done.wait [#allocation6], 8208  }
  0x7b   :  { %1410 = vsyncadd [#allocation6], 4294959088 }
  0x7c   :  { %1411 = dma.done.wait [#allocation9], 272  }
  0x7d   :  { %1412 = vsyncadd [#allocation9], 4294967024 }
  0x7e   :  { %1413 = dma.done.wait [#allocation12], 272  }
  0x7f   :  { %1414 = vsyncadd [#allocation12], 4294967024  ;;  %v1163_v0 = vld [vmem:[#allocation5 + $0x40] sm:$0xff]   ;;  %v1167_v4 = vld [vmem:[#allocation5 + $0x48] sm:$0xff]   ;;  %vm1427_vm0 = vmmov 0   ;;  %vm835_vm1 = vcmask 261120  }
  0x80   :  { %v1164_v1 = vld [vmem:[#allocation5 + $0xc0] sm:$0xff]   ;;  %1041 = vmatprep.subr.bf16.mxu0 %v1163_v0  ;;  %v1168_v5 = vld [vmem:[#allocation5 + $0xc8] sm:$0xff]   ;;  %v1171_v8 = vld [vmem:[#allocation5 + $0x50] sm:$0xff]   ;;  %s1428_s6 = smov [#allocation14]   ;;  %vm948_vm2 = vcmask 64512  }
  0x81   :  { %v1165_v2 = vld [vmem:[#allocation5] sm:$0xff]   ;;  %1063 = vmatprep.subr.bf16.mxu1 %v1164_v1  ;;  %v1169_v6 = vld [vmem:[#allocation5 + $0x8] sm:$0xff]   ;;  %v1172_v9 = vld [vmem:[#allocation5 + $0xd0] sm:$0xff]   ;;  %s956_s13 = sshll.u32 %s1428_s6, 4  ;;  %s957_s13 = int_to_ptr.vmem [resolvable:$true] %s956_s13 }
  0x82   :  { %v1166_v3 = vld [vmem:[#allocation5 + $0x80] sm:$0xff]   ;;  %1042 = vmatpush3.bf16.msra.mxu0 %v1165_v2  ;;  %v1170_v7 = vld [vmem:[#allocation5 + $0x88] sm:$0xff]   ;;  %v1173_v10 = vld [vmem:[#allocation5 + $0x10] sm:$0xff]   ;;  %s1385_s0 = scalar_lea.vmem %s957_s13, 128  ;;  %p1390_p1 = scmp.lt.s32.totalorder %s957_s13, %s957_s13 }
  0x83   :  { %1064 = vmatpush3.bf16.msra.mxu1 %v1166_v3  ;;  %1043 = vmatprep.subr.bf16.mxu0 %v1167_v4  ;;  %v1174_v11 = vld [vmem:[#allocation5 + $0x90] sm:$0xff]   ;;  %v1175_v12 = vld [vmem:[#allocation5 + $0x58] sm:$0xff]   ;;  %v1179_v16 = vld [vmem:[#allocation5 + $0x60] sm:$0xff]   ;;  %p1386_p0 = scmp.ne.s32.totalorder %s957_s13, %s1385_s0  ;;  %p1391_p2 = scmp.lt.s32.totalorder %s1385_s0, %s1385_s0 }
  0x84   :  { %1065 = vmatprep.subr.bf16.mxu1 %v1168_v5  ;;  %v1176_v13 = vld [vmem:[#allocation5 + $0xd8] sm:$0xff]   ;;  %v1180_v17 = vld [vmem:[#allocation5 + $0xe0] sm:$0xff]   ;;  %v1183_v20 = vld [vmem:[#allocation5 + $0x68] sm:$0xff]  }
  0x85   :  { %v1177_v14 = vld [vmem:[#allocation5 + $0x18] sm:$0xff]   ;;  %v1181_v18 = vld [vmem:[#allocation5 + $0x20] sm:$0xff]   ;;  %v1184_v21 = vld [vmem:[#allocation5 + $0xe8] sm:$0xff]   ;;  %p1392_p3 = por %p1391_p2, %p1390_p1 }
  0x86   :  { %1044 = vmatpush3.bf16.msra.mxu0 %v1169_v6  ;;  %v1178_v15 = vld [vmem:[#allocation5 + $0x98] sm:$0xff]   ;;  %v1182_v19 = vld [vmem:[#allocation5 + $0xa0] sm:$0xff]   ;;  %v1185_v22 = vld [vmem:[#allocation5 + $0x28] sm:$0xff]  }
  0x87   :  { %1066 = vmatpush3.bf16.msra.mxu1 %v1170_v7  ;;  %1045 = vmatprep.subr.bf16.mxu0 %v1171_v8  ;;  %v1186_v23 = vld [vmem:[#allocation5 + $0xa8] sm:$0xff]   ;;  %v1187_v24 = vld [vmem:[#allocation5 + $0x70] sm:$0xff]   ;;  %v1191_v28 = vld [vmem:[#allocation5 + $0x78] sm:$0xff]   ;;  %p1393_p4 = pnand %p1392_p3, %p1386_p0 }
  0x88   :  { %1067 = vmatprep.subr.bf16.mxu1 %v1172_v9  ;;  %v1188_v25 = vld [vmem:[#allocation5 + $0xf0] sm:$0xff]   ;;  %v1192_v29 = vld [vmem:[#allocation5 + $0xf8] sm:$0xff]   ;;  %v116_v32 = vld [vmem:[#allocation2 + $0x8] sm:$0xff] }
  0x89   :  { %v1189_v26 = vld [vmem:[#allocation5 + $0x30] sm:$0xff]   ;;  %v1193_v30 = vld [vmem:[#allocation5 + $0x38] sm:$0xff]   ;;  %v115_v34 = vld [vmem:[#allocation2] sm:$0xff]  ;;  %v124_v35 = vpack.c.bf16 %v116_v32, %v116_v32 }
  0x8a   :  { %1046 = vmatpush3.bf16.msra.mxu0 %v1173_v10  ;;  %v1190_v27 = vld [vmem:[#allocation5 + $0xb0] sm:$0xff]   ;;  %v1194_v31 = vld [vmem:[#allocation5 + $0xb8] sm:$0xff]   ;;  %v123_v37 = vpack.c.bf16 %v115_v34, %v115_v34  ;;  %v1195_v40 = vld [vmem:[#allocation5 + $0x140] sm:$0xff]  }
  0x8b   :  { %1068 = vmatpush3.bf16.msra.mxu1 %v1174_v11  ;;  %1047 = vmatprep.subr.bf16.mxu0 %v1175_v12  ;;  %v118_v33 = vld [vmem:[#allocation2 + $0x18] sm:$0xff]  ;;  %v117_v38 = vld [vmem:[#allocation2 + $0x10] sm:$0xff]  ;;  %v1196_v41 = vld [vmem:[#allocation5 + $0x1c0] sm:$0xff]  }
  0x8c   :  { %1069 = vmatprep.subr.bf16.mxu1 %v1176_v13  ;;  %v126_v36 = vpack.c.bf16 %v118_v33, %v118_v33  ;;  %v125_v39 = vpack.c.bf16 %v117_v38, %v117_v38  ;;  %682 = vmatprep.mubr.bf16.mxu0 %v124_v35  ;;  %v1197_v42 = vld [vmem:[#allocation5 + $0x100] sm:$0xff]   ;;  %v1199_v44 = vld [vmem:[#allocation5 + $0x148] sm:$0xff]   ;;  %v1203_v48 = vld [vmem:[#allocation5 + $0x150] sm:$0xff]  }
  0x8d   :  { %v1198_v43 = vld [vmem:[#allocation5 + $0x180] sm:$0xff]   ;;  %v1200_v45 = vld [vmem:[#allocation5 + $0x1c8] sm:$0xff]   ;;  %v1204_v49 = vld [vmem:[#allocation5 + $0x1d0] sm:$0xff]  }
  0x8e   :  { %1048 = vmatpush3.bf16.msra.mxu0 %v1177_v14  ;;  %722 = vmatprep.mubr.bf16.mxu1 %v126_v36  ;;  %v1201_v46 = vld [vmem:[#allocation5 + $0x108] sm:$0xff]   ;;  %v1205_v50 = vld [vmem:[#allocation5 + $0x110] sm:$0xff]   ;;  %v1207_v52 = vld [vmem:[#allocation5 + $0x158] sm:$0xff]  }
  0x8f   :  { %1070 = vmatpush3.bf16.msra.mxu1 %v1178_v15  ;;  %1049 = vmatprep.subr.bf16.mxu0 %v1179_v16  ;;  %v1202_v47 = vld [vmem:[#allocation5 + $0x188] sm:$0xff]   ;;  %v1206_v51 = vld [vmem:[#allocation5 + $0x190] sm:$0xff]   ;;  %v1208_v53 = vld [vmem:[#allocation5 + $0x1d8] sm:$0xff]  }
  0x90   :  { %1071 = vmatprep.subr.bf16.mxu1 %v1180_v17  ;;  %v1209_v54 = vld [vmem:[#allocation5 + $0x118] sm:$0xff]   ;;  %v1211_v56 = vld [vmem:[#allocation5 + $0x160] sm:$0xff]   ;;  %v1215_v60 = vld [vmem:[#allocation5 + $0x168] sm:$0xff]   ;;  %v1426_v17 = vmov 0.0  }
  0x91   :  { %v1210_v55 = vld [vmem:[#allocation5 + $0x198] sm:$0xff]   ;;  %v1212_v57 = vld [vmem:[#allocation5 + $0x1e0] sm:$0xff]   ;;  %v1216_v61 = vld [vmem:[#allocation5 + $0x1e8] sm:$0xff]  }
  0x92   :  { %1050 = vmatpush3.bf16.msra.mxu0 %v1181_v18  ;;  %v1213_v58 = vld [vmem:[#allocation5 + $0x120] sm:$0xff]   ;;  %v1217_v62 = vld [vmem:[#allocation5 + $0x128] sm:$0xff]   ;;  %v1219_v0 = vld [vmem:[#allocation5 + $0x170] sm:$0xff]  }
  0x93   :  { %1072 = vmatpush3.bf16.msra.mxu1 %v1182_v19  ;;  %1051 = vmatprep.subr.bf16.mxu0 %v1183_v20  ;;  %v1214_v59 = vld [vmem:[#allocation5 + $0x1a0] sm:$0xff]   ;;  %v1218_v63 = vld [vmem:[#allocation5 + $0x1a8] sm:$0xff]   ;;  %v1220_v1 = vld [vmem:[#allocation5 + $0x1f0] sm:$0xff]  }
  0x94   :  { %1073 = vmatprep.subr.bf16.mxu1 %v1184_v21  ;;  %v1221_v2 = vld [vmem:[#allocation5 + $0x130] sm:$0xff]   ;;  %v1223_v4 = vld [vmem:[#allocation5 + $0x178] sm:$0xff]   ;;  %v120_v8 = vld [vmem:[#allocation2 + $0x28] sm:$0xff] }
  0x95   :  { %v1222_v3 = vld [vmem:[#allocation5 + $0x1b0] sm:$0xff]   ;;  %v1224_v5 = vld [vmem:[#allocation5 + $0x1f8] sm:$0xff]   ;;  %v128_v10 = vpack.c.bf16 %v120_v8, %v120_v8  ;;  %v119_v12 = vld [vmem:[#allocation2 + $0x20] sm:$0xff] }
  0x96   :  { %1052 = vmatpush3.bf16.msra.mxu0 %v1185_v22  ;;  %v1225_v6 = vld [vmem:[#allocation5 + $0x138] sm:$0xff]   ;;  %v121_v13 = vld [vmem:[#allocation2 + $0x30] sm:$0xff]  ;;  %v127_v14 = vpack.c.bf16 %v119_v12, %v119_v12  ;;  %v1227_v16 = vld [vmem:[#allocation8] sm:$0xff]  }
  0x97   :  { %1074 = vmatpush3.bf16.msra.mxu1 %v1186_v23  ;;  %1053 = vmatprep.subr.bf16.mxu0 %v1187_v24  ;;  %v1226_v7 = vld [vmem:[#allocation5 + $0x1b8] sm:$0xff]   ;;  %v129_v15 = vpack.c.bf16 %v121_v13, %v121_v13  ;;  %v1228_v18 = vld [vmem:[#allocation8 + $0x8] sm:$0xff]   ;;  %v968_v22 = vld [vmem:[#allocation7] ss:$0 sm:$0xff] }
  0x98   :  { %1075 = vmatprep.subr.bf16.mxu1 %v1188_v25  ;;  %v122_v9 = vld [vmem:[#allocation2 + $0x38] sm:$0xff] }
  0x99   :  { %v130_v11 = vpack.c.bf16 %v122_v9, %v122_v9  ;;  %v1229_v19 = vld [vmem:[#allocation11] sm:$0xff]  }
  0x9a   :  { %1054 = vmatpush3.bf16.msra.mxu0 %v1189_v26 }
  0x9b   :  { %1076 = vmatpush3.bf16.msra.mxu1 %v1190_v27  ;;  %1055 = vmatprep.subr.bf16.mxu0 %v1191_v28 }
  0x9c   :  { %1077 = vmatprep.subr.bf16.mxu1 %v1192_v29 }
  0x9e   :  { %1056 = vmatpush3.bf16.msra.mxu0 %v1193_v30 }
  0x9f   :  { %1078 = vmatpush3.bf16.msra.mxu1 %v1194_v31  ;;  %1085 = vmatprep.subr.bf16.mxu0 %v1195_v40 }
  0xa0   :  { %1107 = vmatprep.subr.bf16.mxu1 %v1196_v41 }
  0xa1   :  { %683 = vmatmul.mubr.bf16.vlgmr.msra.gmra.mrb[0].mxu0 %v123_v37 }
  0xa2   :  { %723 = vmatmul.mubr.bf16.vlgmr.msra.gmra.mrb[0].mxu1 %v125_v39  ;;  %1086 = vmatpush3.bf16.msra.mxu0 %v1197_v42 }
  0xa3   :  { %1108 = vmatpush3.bf16.msra.mxu1 %v1198_v43  ;;  %1087 = vmatprep.subr.bf16.mxu0 %v1199_v44 }
  0xa4   :  { %1109 = vmatprep.subr.bf16.mxu1 %v1200_v45  ;;  %762 = vmatprep.mubr.bf16.mxu0 %v128_v10 }
  0xa5   :  { %802 = vmatprep.mubr.bf16.mxu1 %v130_v11 }
  0xa6   :  { %1088 = vmatpush3.bf16.msra.mxu0 %v1201_v46 }
  0xa7   :  { %1110 = vmatpush3.bf16.msra.mxu1 %v1202_v47  ;;  %1089 = vmatprep.subr.bf16.mxu0 %v1203_v48  ;;  %v1230_v47 = vld [vmem:[#allocation11 + $0x8] sm:$0xff]   ;;  %v1033_v48 = vld [vmem:[#allocation10] ss:$0 sm:$0xff] }
  0xa8   :  { %1111 = vmatprep.subr.bf16.mxu1 %v1204_v49 }
  0xaa   :  { %1090 = vmatpush3.bf16.msra.mxu0 %v1205_v50 }
  0xab   :  { %1112 = vmatpush3.bf16.msra.mxu1 %v1206_v51  ;;  %1091 = vmatprep.subr.bf16.mxu0 %v1207_v52 }
  0xac   :  { %1113 = vmatprep.subr.bf16.mxu1 %v1208_v53 }
  0xae   :  { %1092 = vmatpush3.bf16.msra.mxu0 %v1209_v54 }
  0xaf   :  { %1114 = vmatpush3.bf16.msra.mxu1 %v1210_v55  ;;  %1093 = vmatprep.subr.bf16.mxu0 %v1211_v56  ;;  %v1037_v56 = vld [vmem:[#allocation13] ss:$0 sm:$0xff] }
  0xb0   :  { %1115 = vmatprep.subr.bf16.mxu1 %v1212_v57 }
  0xb2   :  { %1094 = vmatpush3.bf16.msra.mxu0 %v1213_v58 }
  0xb3   :  { %1116 = vmatpush3.bf16.msra.mxu1 %v1214_v59  ;;  %1095 = vmatprep.subr.bf16.mxu0 %v1215_v60 }
  0xb4   :  { %1117 = vmatprep.subr.bf16.mxu1 %v1216_v61 }
  0xb6   :  { %1096 = vmatpush3.bf16.msra.mxu0 %v1217_v62 }
  0xb7   :  { %1118 = vmatpush3.bf16.msra.mxu1 %v1218_v63  ;;  %1097 = vmatprep.subr.bf16.mxu0 %v1219_v0 }
  0xb8   :  { %1119 = vmatprep.subr.bf16.mxu1 %v1220_v1 }
  0xba   :  { %1098 = vmatpush3.bf16.msra.mxu0 %v1221_v2 }
  0xbb   :  { %1120 = vmatpush3.bf16.msra.mxu1 %v1222_v3  ;;  %1099 = vmatprep.subr.bf16.mxu0 %v1223_v4 }
  0xbc   :  { %1121 = vmatprep.subr.bf16.mxu1 %v1224_v5 }
  0xbe   :  { %1100 = vmatpush3.bf16.msra.mxu0 %v1225_v6 }
  0xbf   :  { %1122 = vmatpush3.bf16.msra.mxu1 %v1226_v7  ;;  %1135 = vmatprep.subr.bf16.mxu0 %v1426_v17 }
  0xc0   :  { %1143 = vmatprep.subr.bf16.mxu1 %v1426_v17 }
  0xc1   :  { %763 = vmatmul.mubr.bf16.vlgmr.msra.gmra.mrb[4].mxu0 %v127_v14 }
  0xc2   :  { %803 = vmatmul.mubr.bf16.vlgmr.msra.gmra.mrb[4].mxu1 %v129_v15  ;;  %1136 = vmatpush3.bf16.msra.mxu0 %v1227_v16 }
  0xc3   :  { %1137 = vmatprep.subr.bf16.mxu0 %v1426_v17  ;;  %1139 = vmatprep.mubr.msk.bf16.mxu0 %vm1427_vm0, %v1426_v17 }
  0xc4   :  { %1147 = vmatprep.mubr.msk.bf16.mxu1 %vm1427_vm0, %v1426_v17  ;;  %1144 = vmatpush3.bf16.msra.mxu1 %v1229_v19 }
  0xc5   :  { %1145 = vmatprep.subr.bf16.mxu1 %v1426_v17 }
  0xc6   :  { %1138 = vmatpush3.bf16.msra.mxu0 %v1228_v18 }
  0xc8   :  { %1146 = vmatpush3.bf16.msra.mxu1 %v1230_v47 }
 0x174   :  { %v1057_v20 = vpop.f32.mrb[0].mxu0 }
 0x175   :  { %v1079_v21 = vpop.f32.mrb[0].mxu1  ;;  %v1058_v23 = vpop.f32.mrb[1].mxu0 }
 0x176   :  { %v1080_v24 = vpop.f32.mrb[1].mxu1  ;;  %v1059_v25 = vadd.f32 %v1058_v23, %v1057_v20  ;;  %v1060_v27 = vpop.f32.mrb[2].mxu0 }
 0x177   :  { %v1081_v26 = vadd.f32 %v1080_v24, %v1079_v21  ;;  %v1082_v28 = vpop.f32.mrb[2].mxu1  ;;  %v1061_v29 = vpop.f32.mrb[3].mxu0 }
 0x178   :  { %v1083_v30 = vpop.f32.mrb[3].mxu1  ;;  %v685_v31 = vadd.f32 %v1059_v25, %v968_v22 }
 0x17a   :  { %v725_v32 = vadd.f32 %v1081_v26, %v685_v31 }
 0x194   :  { %v1101_v33 = vpop.f32.mrb[4].mxu0 }
 0x195   :  { %v1123_v34 = vpop.f32.mrb[4].mxu1  ;;  %v1102_v35 = vpop.f32.mrb[5].mxu0 }
 0x196   :  { %v1103_v36 = vadd.f32 %v1102_v35, %v1101_v33  ;;  %v1124_v37 = vpop.f32.mrb[5].mxu1  ;;  %v1104_v38 = vpop.f32.mrb[6].mxu0 }
 0x197   :  { %v1125_v39 = vadd.f32 %v1124_v37, %v1123_v34  ;;  %v1126_v40 = vpop.f32.mrb[6].mxu1  ;;  %v1105_v41 = vpop.f32.mrb[7].mxu0 }
 0x198   :  { %v765_v42 = vadd.f32 %v1103_v36, %v725_v32  ;;  %v1127_v43 = vpop.f32.mrb[7].mxu1 }
 0x19a   :  { %v805_v44 = vadd.f32 %v1125_v39, %v765_v42 }
 0x19c   :  { %v810_v45 = vmax.f32 %v805_v44, 0.0 }
 0x19e   :  { %v811_v46 = vpack.c.bf16 %v810_v45, %v810_v45 }
 0x1a0   :  { %1140 = vmatmul.mubr.msk.bf16.vlgmr.msra.gmra.mrb[8].mxu0 %vm835_vm1, %v811_v46 }
 0x273   :  { %v873_v49 = vpop.f32.mrb[8].mxu0 }
 0x274   :  { %v874_v50 = vadd.f32 %v1033_v48, %v873_v49  ;;  %v1141_v51 = vpop.f32.mrb[9].mxu0 }
 0x275   :  { %v876_v52 = vpop.f32.mrb[10].mxu0 }
 0x276   :  { %v879_v53 = vmax.f32 %v874_v50, 0.0  ;;  %v1142_v54 = vpop.f32.mrb[11].mxu0 }
 0x278   :  { %v880_v55 = vpack.c.bf16 %v879_v53, %v879_v53 }
 0x27a   :  { %1148 = vmatmul.mubr.msk.bf16.vlgmr.msra.gmra.mrb[8].mxu1 %vm835_vm1, %v880_v55 }
 0x34d   :  { %v941_v57 = vpop.f32.mrb[8].mxu1 }
 0x34e   :  { %v942_v58 = vadd.f32 %v1037_v56, %v941_v57  ;;  %v1149_v59 = vpop.f32.mrb[9].mxu1 }
 0x34f   :  { %v944_v60 = vpop.f32.mrb[10].mxu1 }
 0x350   :  { %v947_v61 = vmax.f32 %v942_v58, 0.0  ;;  %v1150_v62 = vpop.f32.mrb[11].mxu1 }
 0x352   :  { %949 = vst.msk [vmem:[#allocation14] sm:$0xff] %vm948_vm2, %v947_v61 }
 0x353   :  { %1396 = shalt.err (!%p1393_p4)
}
 0x354   :  { %s1397_s15 = scalar_lea.hbm %s1581_s7, 128 }
 0x355   :  { %p1398_p5 = scmp.ne.s32.totalorder %s1581_s7, %s1397_s15  ;;  %p1401_p6 = scmp.lt.u32.totalorder %s1397_s15, %s1581_s7 }
 0x357   :  { %p1403_p7 = pnand %p1401_p6, %p1398_p5 }
 0x359   :  { %1406 = shalt.err (!%p1403_p7)
}
 0x35a   :  { %959 = dma.vmem_to_hbm [thread:$0]  %s957_s13, 128, %s1581_s7, [#allocation4]  }
 0x35b   :  { %1415 = dma.done.wait [#allocation4], 128  }
 0x35c   :  { %1416 = vsyncadd [#allocation4], 4294967168 }
 0x35d   :  { %963 = vsyncpa [#allocation3], 1 }
 0x35e   :  { %964 = vsyncpa [#allocation6], 1 }
 0x35f   :  { %965 = vsyncpa [#allocation9], 1 }
 0x360   :  { %966 = vsyncpa [#allocation12], 1 }
 0x361   :  { %967 = vsyncpa [#allocation4], 1 }

</bundles_post_ra>
